<compile_context>
chip_gen: v6e
topology: v6e:2x2x1
jax: 0.10.0
libtpu: 0.0.40
codegen_flags: <defaults>
</compile_context>

<pallas_src>
import functools

import jax
import jax.numpy as jnp
import numpy as np
from jax import lax
from jax.experimental import pallas as pl
from jax.experimental.pallas import tpu as pltpu


def _focal_kernel(x_ref, tgt_ref, out_ref, facc_ref, aacc_ref, *,
                  gamma, smooth, alpha_tuple, hw_valid, m_total,
                  size_average, needs_mask):
    n = pl.program_id(0)
    s = pl.program_id(1)

    @pl.when((n == 0) & (s == 0))
    def _():
        facc_ref[...] = jnp.zeros_like(facc_ref)
        aacc_ref[...] = jnp.zeros_like(aacc_ref)

    x = x_ref[0].astype(jnp.float32)       # (C, TM) logits, lane-dense
    tgt = tgt_ref[0]                       # (1, TM) int32 class ids
    c_dim, tm = x.shape

    # ---- softmax over the class (sublane) axis, unrolled over C ------------
    x_max = x[0:1, :]
    for c in range(1, c_dim):
        x_max = jnp.maximum(x_max, x[c:c + 1, :])
    ex = jnp.exp(x - x_max)                # (C, TM)
    denom = ex[0:1, :]
    for c in range(1, c_dim):
        denom = denom + ex[c:c + 1, :]

    # ---- gather exp(x_target) and alpha[target] via unrolled class compares -
    ex_t = jnp.zeros((1, tm), jnp.float32)
    a_sel = jnp.zeros((1, tm), jnp.float32)
    for c in range(c_dim):
        is_c = tgt == c
        ex_t = jnp.where(is_c, ex[c:c + 1, :], ex_t)
        a_sel = jnp.where(is_c, jnp.float32(alpha_tuple[c]), a_sel)

    # Exact divide over only (1, TM) (not the full (C, TM) prob matrix).
    # pl.reciprocal(denom, approx=True) would move this to the EUP slot, but
    # exact division keeps tight numerical parity with the reference.
    p_t = ex_t / denom

    if smooth is not None and smooth:
        # clamp(one_hot, smooth, 1-smooth) . probs == (1-s)*p_t + s*(1-p_t)
        p_t = jnp.float32(1.0 - smooth) * p_t + jnp.float32(smooth) * (1.0 - p_t)

    pt = p_t + jnp.float32(1e-10)
    logpt = jnp.log(pt)
    base = 1.0 - pt
    g = float(gamma)
    if g == int(g):
        pow_term = lax.integer_pow(base, int(g))   # VPU only; keeps EUP free
    else:
        pow_term = lax.pow(base, jnp.float32(g))
    focal = pow_term * logpt                        # (1, TM)

    if needs_mask:
        # Only the last spatial block can run past H*W; garbage lanes are
        # dropped with a select (so NaN/Inf in them cannot leak in).
        lane = lax.broadcasted_iota(jnp.int32, (1, tm), 1) + s * tm
        valid = lane < hw_valid
        zero = jnp.zeros((1, tm), jnp.float32)
        focal = jnp.where(valid, focal, zero)
        a_sel = jnp.where(valid, a_sel, zero)

    facc_ref[...] += focal
    aacc_ref[...] += a_sel

    @pl.when((n == pl.num_programs(0) - 1) & (s == pl.num_programs(1) - 1))
    def _():
        f_sum = jnp.sum(facc_ref[...])
        a_sum = jnp.sum(aacc_ref[...])
        if size_average:
            inv_m = jnp.float32(1.0 / m_total)
            # mean of the (M,1,M) broadcast loss = mean(alpha_sel) * mean(focal)
            out_ref[0, 0] = -(a_sum * inv_m) * (f_sum * inv_m)
        else:
            # sum of the (M,1,M) broadcast loss = sum(alpha_sel) * sum(focal)
            out_ref[0, 0] = -(a_sum * f_sum)


def _build_alpha(num_class, alpha, balance_index):
    if alpha is None:
        a = np.ones((num_class,), np.float32)
    elif isinstance(alpha, (list, np.ndarray)):
        a = np.asarray(alpha, np.float32).reshape(num_class)
        a = a / a.sum()
    elif isinstance(alpha, float):
        a = np.full((num_class,), 1.0 - alpha, np.float32)
        a[balance_index] = alpha
    else:
        raise TypeError('Not support alpha type')
    return a


def multi_focal_loss(x_nchw, target, *, num_class, alpha=None, gamma=2.0,
                     balance_index=-1, smooth=None, size_average=True,
                     max_block_lanes=65536):
    """Pallas implementation of MultiFocalLoss.forward (returns a scalar)."""
    if smooth is not None and (smooth < 0 or smooth > 1.0):
        raise ValueError('smooth value should be in [0,1]')

    N, C, H, W = x_nchw.shape
    assert C == num_class
    HW = H * W

    # Free reshapes only (NCHW is contiguous): no transpose, no extra HBM pass.
    # Logits keep their input dtype (bf16 stays bf16 in HBM; cast in-kernel).
    x_rows = x_nchw.reshape(N, C, HW)
    tgt_rows = target.reshape(N, 1, HW).astype(jnp.int32)

    # alpha is static (built from Python config) -> bake it into the kernel.
    alpha_tuple = tuple(float(v) for v in _build_alpha(num_class, alpha, balance_index))

    # Lane-dense tiling: H*W is the lane axis.  Budget the block so the
    # double-buffered pipeline stays well under the scoped-VMEM limit on every
    # generation (v7x: 64 MiB physical / 32 MiB default scoped VMEM).
    itemsize = np.dtype(x_nchw.dtype).itemsize
    bytes_per_lane = C * itemsize + 4                       # logits + int32 target
    budget = 8 << 20                                        # per in-flight buffer
    lane_cap = max(128, min(max_block_lanes,
                            (budget // bytes_per_lane) // 128 * 128))
    if HW <= lane_cap:
        TM = HW                                             # whole spatial extent per block
    else:
        TM = lane_cap                                       # multiple of 128
    n_s = -(-HW // TM)
    needs_mask = (HW % TM) != 0
    grid = (N, n_s)
    # TODO(synk): optional v7x dual-TensorCore split (leading 'parallel' axis with
    # per-core partial outputs combined in the wrapper) if the kernel turns out
    # VPU-bound after the layout changes; currently treated as HBM-bound.

    kernel = functools.partial(
        _focal_kernel, gamma=gamma, smooth=smooth, alpha_tuple=alpha_tuple,
        hw_valid=HW, m_total=N * HW, size_average=size_average,
        needs_mask=needs_mask)

    out = pl.pallas_call(
        kernel,
        out_shape=jax.ShapeDtypeStruct((1, 1), jnp.float32),
        grid_spec=pltpu.PrefetchScalarGridSpec(
            num_scalar_prefetch=0,
            grid=grid,
            in_specs=[
                pl.BlockSpec((1, C, TM), lambda n, s: (n, 0, s)),
                pl.BlockSpec((1, 1, TM), lambda n, s: (n, 0, s)),
            ],
            out_specs=pl.BlockSpec((1, 1), lambda n, s: (0, 0),
                                   memory_space=pltpu.SMEM),
            scratch_shapes=[pltpu.VMEM((1, TM), jnp.float32),
                            pltpu.VMEM((1, TM), jnp.float32)],
        ),
        compiler_params=pltpu.CompilerParams(
            dimension_semantics=("arbitrary", "arbitrary")),
    )(x_rows, tgt_rows)
    return out[0, 0]


def _reference_loss(x_nchw, target, *, num_class, gamma=2.0, alpha=None,
                    balance_index=-1, smooth=None, size_average=True):
    """Pure-JAX re-implementation of the PyTorch forward (for verification)."""
    N, C, H, W = x_nchw.shape
    probs = jax.nn.softmax(x_nchw.astype(jnp.float32), axis=1)
    rows = jnp.transpose(probs, (0, 2, 3, 1)).reshape(-1, C)
    tgt = target.reshape(-1).astype(jnp.int32)
    one_hot = jax.nn.one_hot(tgt, C, dtype=jnp.float32)
    if smooth:
        one_hot = jnp.clip(one_hot, smooth, 1.0 - smooth)
    pt = jnp.sum(one_hot * rows, axis=-1) + 1e-10
    focal = (1.0 - pt) ** gamma * jnp.log(pt)
    alpha_vec = jnp.asarray(_build_alpha(num_class, alpha, balance_index))
    a_sel = alpha_vec[tgt]
    if size_average:
        return -jnp.mean(a_sel) * jnp.mean(focal)
    return -jnp.sum(a_sel) * jnp.sum(focal)


if __name__ == "__main__":
    key = jax.random.PRNGKey(0)
    kx, kt = jax.random.split(key)
    N, C, H, W = 2, 4, 16, 16
    x = jax.random.normal(kx, (N, C, H, W), dtype=jnp.float32)
    target = jax.random.randint(kt, (N, H, W), 0, C, dtype=jnp.int32)

    # config 1: defaults (alpha=None, gamma=2, no smoothing, mean reduction)
    loss = multi_focal_loss(x, target, num_class=C, alpha=None, gamma=2.0,
                            smooth=None, size_average=True)
    loss = jax.block_until_ready(loss)
    ref = _reference_loss(x, target, num_class=C, gamma=2.0, alpha=None,
                          smooth=None, size_average=True)
    ref = jax.block_until_ready(ref)
    assert np.isfinite(float(loss))
    np.testing.assert_allclose(np.asarray(loss), np.asarray(ref),
                               rtol=2e-5, atol=1e-5)

    # config 2: alpha list + label smoothing + sum reduction
    loss2 = multi_focal_loss(x, target, num_class=C,
                             alpha=[0.1, 0.2, 0.3, 0.4], gamma=2.0,
                             smooth=0.1, size_average=False)
    loss2 = jax.block_until_ready(loss2)
    ref2 = _reference_loss(x, target, num_class=C, gamma=2.0,
                           alpha=[0.1, 0.2, 0.3, 0.4], smooth=0.1,
                           size_average=False)
    ref2 = jax.block_until_ready(ref2)
    assert np.isfinite(float(loss2))
    np.testing.assert_allclose(np.asarray(loss2), np.asarray(ref2),
                               rtol=2e-5, atol=1e-4)

    print("KERNEL_OK")
</pallas_src>

<mosaic_0001>
module attributes {stable_mosaic.version = 11 : i64} {
  func.func @_focal_kernel(%arg0: i32, %arg1: i32, %arg2: memref<1x4x256xf32, #tpu.memory_space<vmem>>, %arg3: memref<1x1x256xi32, #tpu.memory_space<vmem>>, %arg4: memref<1x1xf32, #tpu.memory_space<smem>>, %arg5: memref<1x256xf32, #tpu.memory_space<vmem>>, %arg6: memref<1x256xf32, #tpu.memory_space<vmem>>) attributes {dimension_semantics = [#tpu.dimension_semantics<arbitrary>, #tpu.dimension_semantics<arbitrary>], iteration_bounds = array<i64: 2, 1>, scalar_prefetch = 0 : i64, scratch_operands = 2 : i64, tpu.core_type = #tpu.core_type<tc>, window_params = [{transform_indices = @transform_0, window_bounds = array<i64: 1, 4, 256>}, {transform_indices = @transform_1, window_bounds = array<i64: 1, 1, 256>}, {transform_indices = @transform_2, window_bounds = array<i64: 1, 1>}]} {
    %c0_i32 = arith.constant 0 : i32
    %0 = arith.cmpi eq, %arg0, %c0_i32 : i32
    %c0_i32_0 = arith.constant 0 : i32
    %1 = arith.cmpi eq, %arg1, %c0_i32_0 : i32
    %2 = arith.andi %0, %1 : i1
    %3 = arith.extui %2 : i1 to i32
    %c0_i32_1 = arith.constant 0 : i32
    %4 = arith.cmpi ne, %3, %c0_i32_1 : i32
    scf.if %4 {
      %cst_26 = arith.constant 0.000000e+00 : f32
      %71 = vector.broadcast %cst_26 : f32 to vector<1x256xf32>
      %c0_27 = arith.constant 0 : index
      %c0_28 = arith.constant 0 : index
      %72 = vector.load %arg5[%c0_27, %c0_28] : memref<1x256xf32, #tpu.memory_space<vmem>>, vector<1x256xf32>
      tpu.vector_store %arg5[%c0_27, %c0_28], %71 {strides = array<i32>} : memref<1x256xf32, #tpu.memory_space<vmem>>, vector<1x256xf32>,
      %cst_29 = arith.constant 0.000000e+00 : f32
      %73 = vector.broadcast %cst_29 : f32 to vector<1x256xf32>
      %c0_30 = arith.constant 0 : index
      %c0_31 = arith.constant 0 : index
      %74 = vector.load %arg6[%c0_30, %c0_31] : memref<1x256xf32, #tpu.memory_space<vmem>>, vector<1x256xf32>
      tpu.vector_store %arg6[%c0_30, %c0_31], %73 {strides = array<i32>} : memref<1x256xf32, #tpu.memory_space<vmem>>, vector<1x256xf32>,
    } else {
    }
    %c0 = arith.constant 0 : index
    %c0_2 = arith.constant 0 : index
    %c0_3 = arith.constant 0 : index
    %5 = vector.load %arg2[%c0, %c0_2, %c0_3] : memref<1x4x256xf32, #tpu.memory_space<vmem>>, vector<1x4x256xf32>
    %6 = vector.shape_cast %5 : vector<1x4x256xf32> to vector<4x256xf32>
    %c0_4 = arith.constant 0 : index
    %c0_5 = arith.constant 0 : index
    %c0_6 = arith.constant 0 : index
    %7 = vector.load %arg3[%c0_4, %c0_5, %c0_6] : memref<1x1x256xi32, #tpu.memory_space<vmem>>, vector<1x1x256xi32>
    %8 = vector.shape_cast %7 : vector<1x1x256xi32> to vector<1x256xi32>
    %9 = vector.extract_strided_slice %6 {offsets = [0, 0], sizes = [1, 256], strides = [1, 1]} : vector<4x256xf32> to vector<1x256xf32>
    %10 = vector.extract_strided_slice %6 {offsets = [1, 0], sizes = [1, 256], strides = [1, 1]} : vector<4x256xf32> to vector<1x256xf32>
    %11 = arith.maximumf %9, %10 : vector<1x256xf32>
    %12 = vector.extract_strided_slice %6 {offsets = [2, 0], sizes = [1, 256], strides = [1, 1]} : vector<4x256xf32> to vector<1x256xf32>
    %13 = arith.maximumf %11, %12 : vector<1x256xf32>
    %14 = vector.extract_strided_slice %6 {offsets = [3, 0], sizes = [1, 256], strides = [1, 1]} : vector<4x256xf32> to vector<1x256xf32>
    %15 = arith.maximumf %13, %14 : vector<1x256xf32>
    %16 = vector.broadcast %15 : vector<1x256xf32> to vector<4x256xf32>
    %17 = arith.subf %6, %16 : vector<4x256xf32>
    %18 = math.exp %17 : vector<4x256xf32>
    %19 = vector.extract_strided_slice %18 {offsets = [0, 0], sizes = [1, 256], strides = [1, 1]} : vector<4x256xf32> to vector<1x256xf32>
    %20 = vector.extract_strided_slice %18 {offsets = [1, 0], sizes = [1, 256], strides = [1, 1]} : vector<4x256xf32> to vector<1x256xf32>
    %21 = arith.addf %19, %20 : vector<1x256xf32>
    %22 = vector.extract_strided_slice %18 {offsets = [2, 0], sizes = [1, 256], strides = [1, 1]} : vector<4x256xf32> to vector<1x256xf32>
    %23 = arith.addf %21, %22 : vector<1x256xf32>
    %24 = vector.extract_strided_slice %18 {offsets = [3, 0], sizes = [1, 256], strides = [1, 1]} : vector<4x256xf32> to vector<1x256xf32>
    %25 = arith.addf %23, %24 : vector<1x256xf32>
    %cst = arith.constant 0.000000e+00 : f32
    %26 = vector.broadcast %cst : f32 to vector<1x256xf32>
    %cst_7 = arith.constant 0.000000e+00 : f32
    %27 = vector.broadcast %cst_7 : f32 to vector<1x256xf32>
    %c0_i32_8 = arith.constant 0 : i32
    %28 = vector.broadcast %c0_i32_8 : i32 to vector<1x256xi32>
    %29 = arith.cmpi eq, %8, %28 : vector<1x256xi32>
    %30 = vector.extract_strided_slice %18 {offsets = [0, 0], sizes = [1, 256], strides = [1, 1]} : vector<4x256xf32> to vector<1x256xf32>
    %31 = arith.select %29, %30, %26 : vector<1x256xi1>, vector<1x256xf32>
    %cst_9 = arith.constant 1.000000e+00 : f32
    %32 = vector.broadcast %cst_9 : f32 to vector<1x256xf32>
    %33 = arith.select %29, %32, %27 : vector<1x256xi1>, vector<1x256xf32>
    %c1_i32 = arith.constant 1 : i32
    %34 = vector.broadcast %c1_i32 : i32 to vector<1x256xi32>
    %35 = arith.cmpi eq, %8, %34 : vector<1x256xi32>
    %36 = vector.extract_strided_slice %18 {offsets = [1, 0], sizes = [1, 256], strides = [1, 1]} : vector<4x256xf32> to vector<1x256xf32>
    %37 = arith.select %35, %36, %31 : vector<1x256xi1>, vector<1x256xf32>
    %cst_10 = arith.constant 1.000000e+00 : f32
    %38 = vector.broadcast %cst_10 : f32 to vector<1x256xf32>
    %39 = arith.select %35, %38, %33 : vector<1x256xi1>, vector<1x256xf32>
    %c2_i32 = arith.constant 2 : i32
    %40 = vector.broadcast %c2_i32 : i32 to vector<1x256xi32>
    %41 = arith.cmpi eq, %8, %40 : vector<1x256xi32>
    %42 = vector.extract_strided_slice %18 {offsets = [2, 0], sizes = [1, 256], strides = [1, 1]} : vector<4x256xf32> to vector<1x256xf32>
    %43 = arith.select %41, %42, %37 : vector<1x256xi1>, vector<1x256xf32>
    %cst_11 = arith.constant 1.000000e+00 : f32
    %44 = vector.broadcast %cst_11 : f32 to vector<1x256xf32>
    %45 = arith.select %41, %44, %39 : vector<1x256xi1>, vector<1x256xf32>
    %c3_i32 = arith.constant 3 : i32
    %46 = vector.broadcast %c3_i32 : i32 to vector<1x256xi32>
    %47 = arith.cmpi eq, %8, %46 : vector<1x256xi32>
    %48 = vector.extract_strided_slice %18 {offsets = [3, 0], sizes = [1, 256], strides = [1, 1]} : vector<4x256xf32> to vector<1x256xf32>
    %49 = arith.select %47, %48, %43 : vector<1x256xi1>, vector<1x256xf32>
    %cst_12 = arith.constant 1.000000e+00 : f32
    %50 = vector.broadcast %cst_12 : f32 to vector<1x256xf32>
    %51 = arith.select %47, %50, %45 : vector<1x256xi1>, vector<1x256xf32>
    %52 = arith.divf %49, %25 : vector<1x256xf32>
    %cst_13 = arith.constant 1.000000e-10 : f32
    %53 = vector.broadcast %cst_13 : f32 to vector<1x256xf32>
    %54 = arith.addf %52, %53 : vector<1x256xf32>
    %55 = math.log %54 : vector<1x256xf32>
    %cst_14 = arith.constant 1.000000e+00 : f32
    %56 = vector.broadcast %cst_14 : f32 to vector<1x256xf32>
    %57 = arith.subf %56, %54 : vector<1x256xf32>
    %58 = arith.mulf %57, %57 : vector<1x256xf32>
    %59 = arith.mulf %58, %55 : vector<1x256xf32>
    %c0_15 = arith.constant 0 : index
    %c0_16 = arith.constant 0 : index
    %60 = vector.load %arg5[%c0_15, %c0_16] : memref<1x256xf32, #tpu.memory_space<vmem>>, vector<1x256xf32>
    %61 = arith.addf %60, %59 : vector<1x256xf32>
    %c0_17 = arith.constant 0 : index
    %c0_18 = arith.constant 0 : index
    %62 = vector.load %arg5[%c0_17, %c0_18] : memref<1x256xf32, #tpu.memory_space<vmem>>, vector<1x256xf32>
    tpu.vector_store %arg5[%c0_17, %c0_18], %61 {strides = array<i32>} : memref<1x256xf32, #tpu.memory_space<vmem>>, vector<1x256xf32>,
    %c0_19 = arith.constant 0 : index
    %c0_20 = arith.constant 0 : index
    %63 = vector.load %arg6[%c0_19, %c0_20] : memref<1x256xf32, #tpu.memory_space<vmem>>, vector<1x256xf32>
    %64 = arith.addf %63, %51 : vector<1x256xf32>
    %c0_21 = arith.constant 0 : index
    %c0_22 = arith.constant 0 : index
    %65 = vector.load %arg6[%c0_21, %c0_22] : memref<1x256xf32, #tpu.memory_space<vmem>>, vector<1x256xf32>
    tpu.vector_store %arg6[%c0_21, %c0_22], %64 {strides = array<i32>} : memref<1x256xf32, #tpu.memory_space<vmem>>, vector<1x256xf32>,
    %c1_i32_23 = arith.constant 1 : i32
    %66 = arith.cmpi eq, %arg0, %c1_i32_23 : i32
    %c0_i32_24 = arith.constant 0 : i32
    %67 = arith.cmpi eq, %arg1, %c0_i32_24 : i32
    %68 = arith.andi %66, %67 : i1
    %69 = arith.extui %68 : i1 to i32
    %c0_i32_25 = arith.constant 0 : i32
    %70 = arith.cmpi ne, %69, %c0_i32_25 : i32
    scf.if %70 {
      %c0_26 = arith.constant 0 : index
      %c0_27 = arith.constant 0 : index
      %71 = vector.load %arg5[%c0_26, %c0_27] : memref<1x256xf32, #tpu.memory_space<vmem>>, vector<1x256xf32>
      %72 = vector.shape_cast %71 : vector<1x256xf32> to vector<1x1x256xf32>
      %cst_28 = arith.constant dense<0.000000e+00> : vector<1xf32>
      %73 = vector.multi_reduction <add>, %72, %cst_28 [1, 2] : vector<1x1x256xf32> to vector<1xf32>
      %74 = vector.shape_cast %73 : vector<1xf32> to vector<1x1x1xf32>
      %75 = vector.extract %74[0, 0, 0] : f32 from vector<1x1x1xf32>
      %c0_29 = arith.constant 0 : index
      %c0_30 = arith.constant 0 : index
      %76 = vector.load %arg6[%c0_29, %c0_30] : memref<1x256xf32, #tpu.memory_space<vmem>>, vector<1x256xf32>
      %77 = vector.shape_cast %76 : vector<1x256xf32> to vector<1x1x256xf32>
      %cst_31 = arith.constant dense<0.000000e+00> : vector<1xf32>
      %78 = vector.multi_reduction <add>, %77, %cst_31 [1, 2] : vector<1x1x256xf32> to vector<1xf32>
      %79 = vector.shape_cast %78 : vector<1xf32> to vector<1x1x1xf32>
      %80 = vector.extract %79[0, 0, 0] : f32 from vector<1x1x1xf32>
      %cst_32 = arith.constant 0.001953125 : f32
      %81 = arith.mulf %80, %cst_32 : f32
      %cst_33 = arith.constant 0.000000e+00 : f32
      %82 = arith.subf %cst_33, %81 : f32
      %cst_34 = arith.constant 0.001953125 : f32
      %83 = arith.mulf %75, %cst_34 : f32
      %84 = arith.mulf %82, %83 : f32
      %c0_35 = arith.constant 0 : index
      %c0_36 = arith.constant 0 : index
      %85 = memref.load %arg4[%c0_35, %c0_36] : memref<1x1xf32, #tpu.memory_space<smem>>
      memref.store %84, %arg4[%c0_35, %c0_36] : memref<1x1xf32, #tpu.memory_space<smem>>
    } else {
    }
    return
  }
  func.func @transform_0(%arg0: i32, %arg1: i32) -> (i32, i32, i32) {
    %c0_i32 = arith.constant 0 : i32
    %c0_i32_0 = arith.constant 0 : i32
    return %arg0, %c0_i32, %arg1 : i32, i32, i32
  }
  func.func @transform_1(%arg0: i32, %arg1: i32) -> (i32, i32, i32) {
    %c0_i32 = arith.constant 0 : i32
    %c0_i32_0 = arith.constant 0 : i32
    return %arg0, %c0_i32, %arg1 : i32, i32, i32
  }
  func.func @transform_2(%arg0: i32, %arg1: i32) -> (i32, i32) {
    %c0_i32 = arith.constant 0 : i32
    %c0_i32_0 = arith.constant 0 : i32
    %c0_i32_1 = arith.constant 0 : i32
    return %c0_i32, %c0_i32_0 : i32, i32
  }
}

</mosaic_0001>

<bundles_post_ra>
// kernel: tpu_custom_call.1
= control target key start
LH: loop header
LB: loop body
LE: loop exit
PB: predicated region body
PF: predicated region fallthrough
CT: control target
= control target key end

     0   :  { %7 = vsyncpa [#allocation5], 0  ;;  %s920_s0 = inlined_call_operand.hbm [shape: f32[2,4,256], index: 0, kind: input, shape index: {}]   ;;  %s921_s1 = inlined_call_operand.hbm [shape: s32[2,1,256], index: 1, kind: input, shape index: {}]   ;;  %s922_s2 = inlined_call_operand.hbm [shape: f32[1,1], index: 2, kind: output, shape index: {}]  }
   0x1   :  { %9 = vsyncpa [#allocation5 + $0x1], 0 }
   0x2   :  { %10 = vsyncpa [#allocation8], 0 }
   0x3   :  { %12 = vsyncpa [#allocation8 + $0x1], 0 }
   0x4   :  { %13 = vsyncpa [#allocation6], 0  ;;  %s757_s9 = smov 0   ;;  %s759_s10 = smov 0  }
   0x5   :  { %s761_s11 = smov 0   ;;  %s763_s12 = smov 0  }
   0x6   :  { %s765_s13 = smov 0   ;;  %s767_s14 = smov 0  }
   0x7 LB: > { %s502_s15 = sadd.s32 4294967295, %s734_s14   ;;  %s31_s16 = sadd.s32 1, %s730_s13  ;;  %s734_s14 = sphi %s767_s14, %s19_s14   ;;  %s730_s13 = sphi %s765_s13, %s933_s13   ;;  %s726_s12 = sphi %s763_s12, %s932_s12   ;;  %s722_s11 = sphi %s761_s11, %s931_s11   ;;  %s718_s10 = sphi %s759_s10, %s930_s10   ;;  %s714_s9 = sphi %s757_s9, %s929_s9  }
   0x8   : > { %p33_p0 = scmp.ge.s32.totalorder %s31_s16, 2  ;;  %s40_s17 = sadd.s32 1, %s722_s11 }
   0x9   : > { %p47_p1 = scmp.ne.s32.totalorder %s722_s11, %s718_s10  ;;  %p48_p2 = scmp.eq.s32.totalorder %s734_s14, 0 }
   0xa   : > { %s935_s16 = smov (%p33_p0, %s31_s16), 0  ;;  %p53_p4 = scmp.ne.s32.totalorder %s718_s10, %s714_s9 }
   0xb   : > { %p793_p3 = por %p48_p2, %p47_p1  ;;  %s35_s19 = ssub.s32 %s730_s13, %s935_s16 }
   0xc   : > { %p54_p5 = scmp.eq.s32.totalorder %s502_s15, 0  ;;  %p38_p6 = scmp.eq.s32.totalorder %s35_s19, 0 }
   0xd   : > { %p549_p8 = scmp.lt.s32.totalorder %s734_s14, 2  ;;  %s811_s22 = sand.u32 1, %s722_s11  }
   0xe   : > { %p802_p7 = por %p54_p5, %p53_p4  ;;  %s526_s23 = sshll.u32 %s730_s13, 7 }
   0xf   : > { %s808_s21 = scalar_select %p38_p6, %s722_s11, %s40_s17  }
  0x10   : > { %s505_s24 = sshll.u32 %s811_s22, 3  ;;  %s138_s27 = scalar_lea.hbm %s920_s0, %s526_s23 }
  0x11   : > { %s130_s28 = scalar_lea.vmem [#allocation4], %s505_s24  ;;  %p820_p9 = pnand %p549_p8, %p793_p3 }
  0x12   : > { %s140_s29 = sshll.u32 %s130_s28, 4  ;;  %p511_p10 = scmp.ge.s32.totalorder %s734_s14, 1  ;;  %s141_s29 = int_to_ptr.vmem [resolvable:$true] %s140_s29 }
  0x13   : > { %p166_p11 = scmp.lt.s32.totalorder %s734_s14, 3  ;;  %s127_s3 = scalar_lea.sflag [#allocation5], %s811_s22 }
  0x14   : > { %p612_p12 = pneg %p820_p9  ;;  %s623_s4 = scalar_lea.vmem %s141_s29, 128 }
  0x15   : > { %p624_p13 = scmp.ne.s32.totalorder %s141_s29, %s623_s4  ;;  %s736_s5 = smov [#allocation4]  }
  0x16   : > { %s628_s6 = sshll.u32 %s736_s5, 4  ;;  %s629_s6 = int_to_ptr.vmem [resolvable:$false] %s628_s6 }
  0x17   : > { %p626_p0 = pnand %p624_p13, %p612_p12  ;;  %s630_s7 = scalar_lea.vmem %s629_s6, 256 }
  0x18   : > { %p631_p2 = scmp.lt.s32.totalorder %s141_s29, %s629_s6  ;;  %p632_p3 = scmp.lt.s32.totalorder %s630_s7, %s623_s4 }
  0x19   : > { %p627_p1 = pneg %p626_p0 }
  0x1a   : > { %p633_p4 = por %p632_p3, %p631_p2 }
  0x1c   : > { %p634_p5 = pnand %p633_p4, %p627_p1 }
  0x1e   : > { %637 = shalt.err (!%p634_p5)
}
  0x1f   : > { %545 = dma.hbm_to_vmem [thread:$0]  (!%p820_p9), %s138_s27, 128, %s141_s29, %s127_s3  }
  0x20   : > { %p838_p6 = pnand %p511_p10, %p166_p11  ;;  %s508_s9 = sshll.u32 %s811_s22, 1 }
  0x21   : > { %s527_s17 = sshll.u32 %s730_s13, 5  ;;  %s151_s24 = scalar_lea.vmem [#allocation7], %s508_s9 }
  0x22   : > { %s159_s23 = scalar_lea.hbm %s921_s1, %s527_s17  ;;  %s161_s25 = sshll.u32 %s151_s24, 4  ;;  %s162_s25 = int_to_ptr.vmem [resolvable:$true] %s161_s25 }
  0x23   : > { %s148_s26 = scalar_lea.sflag [#allocation8], %s811_s22  ;;  %s651_s28 = scalar_lea.vmem %s162_s25, 32 }
  0x24   : > { %p652_p8 = scmp.ne.s32.totalorder %s162_s25, %s651_s28  ;;  %s737_s27 = smov [#allocation7]  }
  0x25   : > { %s656_s29 = sshll.u32 %s737_s27, 4  ;;  %s657_s29 = int_to_ptr.vmem [resolvable:$false] %s656_s29 }
  0x26   : > { %p654_p13 = pnand %p652_p8, %p612_p12  ;;  %s658_s3 = scalar_lea.vmem %s657_s29, 64 }
  0x27   : > { %p659_p10 = scmp.lt.s32.totalorder %s162_s25, %s657_s29  ;;  %p660_p11 = scmp.lt.s32.totalorder %s658_s3, %s651_s28 }
  0x28   : > { %p655_p0 = pneg %p654_p13 }
  0x29   : > { %p661_p1 = por %p660_p11, %p659_p10 }
  0x2b   : > { %p662_p2 = pnand %p661_p1, %p655_p0 }
  0x2d   : > { %665 = shalt.err (!%p662_p2)
}
  0x2e   : > { %548 = dma.hbm_to_vmem [thread:$0]  (!%p820_p9), %s159_s23, 32, %s162_s25, %s148_s26  }
  0x2f   : > { %170 = sbr.rel (%p838_p6) target bundleno = 376 (0x178), region = 28  ;;  %s172_s22 = sand.u32 (!%p838_p6), 1, %s718_s10  }
  0x30   : > { %s512_s4 = sshll.u32 (!%p838_p6), %s172_s22, 3  ;;  %s173_s5 = scalar_lea.sflag (!%p838_p6), [#allocation5], %s172_s22 }
  0x31   : > { %s176_s6 = scalar_lea.vmem (!%p838_p6), [#allocation4], %s512_s4 }
  0x34   : > { %701 = dma.done.wait (%p802_p7), %s173_s5, 128  }
  0x35   : > { %703 = vsyncadd (%p802_p7), %s173_s5, 4294967168  ;;  %s513_s7 = sshll.u32 %s172_s22, 1  ;;  %s182_s9 = scalar_lea.sflag [#allocation8], %s172_s22 }
  0x36   : > { %s185_s17 = scalar_lea.vmem [#allocation7], %s513_s7 }
  0x37   : > { %705 = dma.done.wait (%p802_p7), %s182_s9, 32  }
  0x38   : > { %707 = vsyncadd (%p802_p7), %s182_s9, 4294967264  ;;  %p208_p9 = scmp.eq.s32.totalorder %s726_s12, 0 }
  0x39   : > { %v214_v0 = vlaneseq (%p208_p9)  ;;  %v738_v1 = vmov (%p208_p9), 0.0  }
  0x3a   : > { %213 = sbr.rel (!%p208_p9) target bundleno = 63 (0x3f), region = 40 }
  0x3b   : > { %vm216_vm0 = vcmp.lt.s32.totalorder (%p208_p9), %v214_v0, 256 }
  0x3c   : > { %218 = vst.msk [vmem:[#allocation2] sm:$0x3] (%p208_p9), %vm216_vm0, %v738_v1  ;;  %219 = vst.msk [vmem:[#allocation3] sm:$0x3] (%p208_p9), %vm216_vm0, %v738_v1 }
  0x3f PF: > { %v220_v2 = vld [vmem:[%s176_s6] sm:$0xff]  ;;  %v221_v3 = vld [vmem:[%s185_s17] sm:$0x3]  ;;  %v236_v4 = vlaneseq  ;;  %p348_p12 = scmp.eq.s32.totalorder %s726_s12, 1  ;;  %v739_v10 = vmov 0.0  }
  0x40   : > { %v515_v5 = vrot.slane %v220_v2, 9  ;;  %v516_v6 = vrot.slane %v220_v2, 10  ;;  %vm274_vm1 = vcmp.eq.s32.totalorder %v221_v3, 0  ;;  %v517_v9 = vrot.slane %v220_v2, 11 }
  0x41   : > { %v865_v7 = vshrl.u32 %v236_v4, 7  ;;  %vm292_vm2 = vcmp.eq.s32.totalorder %v221_v3, 1  ;;  %v291_v11 = vsel %vm274_vm1, 1.0, %v739_v10  ;;  %vm304_vm3 = vcmp.eq.s32.totalorder %v221_v3, 2 }
  0x42   : > { %v226_v8 = vmax.f32 %v220_v2, %v515_v5  ;;  %vm309_vm4 = vcmp.eq.s32.totalorder %v221_v3, 3  ;;  %v303_v12 = vsel %vm292_vm2, 1.0, %v291_v11  ;;  %vm875_vm5 = vcmp.lt.s32.totalorder %v236_v4, 256 }
  0x43   : > { %v345_v13 = vld [vmem:[#allocation3] sm:$0x3]  ;;  %v871_v15 = vsub.s32 0, %v865_v7  ;;  %v242_v16 = vsub.s32 4, %v865_v7  ;;  %v308_v17 = vsel %vm304_vm3, 1.0, %v303_v12  ;;  %v361_v63 = vsub.s32 (%p348_p12), 1, %v865_v7 }
  0x44   : > { %v230_v14 = vmax.f32 %v226_v8, %v516_v6  ;;  %v313_v19 = vsel %vm309_vm4, 1.0, %v308_v17  ;;  %v740_v29 = vmov 1966171168   ;;  %v338_v59 = vld [vmem:[#allocation2] sm:$0x3]  ;;  %vm365_vm6 = vcmask (%p348_p12), 1040384  }
  0x45   : > { %v346_v21 = vadd.f32 %v345_v13, %v313_v19  ;;  %v276_v30 = vunpack.c.l.s4 %v740_v29 }
  0x46   : > { %v234_v20 = vmax.f32 %v230_v14, %v517_v9 }
  0x47   : > { %347 = vst.msk [vmem:[#allocation3] sm:$0x3] %vm875_vm5, %v346_v21  ;;  %v277_v32 = vunpack.c.0.s8 %v276_v30 }
  0x48   : > { %v239_v22 = vrot.slane %v234_v20, %v871_v15  ;;  %v243_v23 = vrot.slane %v234_v20, %v242_v16 }
  0x49   : > { %v280_v37 = vsub.s32 %v277_v32, %v865_v7 }
  0x4a   : > { %v249_v24 = vrot.slane %v239_v22, %v871_v15  ;;  %v253_v25 = vrot.slane %v243_v23, %v871_v15 }
  0x4c   : > { %v256_v26 = vcombine.low %v249_v24, %v253_v25 }
  0x4e   : > { %v258_v27 = vsub.f32 %v220_v2, %v256_v26  ;;  %v378_v0 = vld [vmem:[#allocation3] sm:$0x3] (%p348_p12) }
  0x4f   : > { %v383_v2 = vrot.slane (%p348_p12), %v378_v0, %v871_v15  ;;  %v387_v4 = vrot.slane (%p348_p12), %v378_v0, %v361_v63 }
  0x50   : > { %v259_v28 = vmul.f32 1.442695, %v258_v27 }
  0x51   : > { %v390_v8 = vsel (%p348_p12), %vm365_vm6, %v383_v2, 0.0  ;;  %v391_v9 = vsel (%p348_p12), %vm365_vm6, %v387_v4, 0.0 }
  0x52   : > { %604 = vpow2.f32 %v259_v28  ;;  %v392_v11 = vadd.f32 (%p348_p12), %v391_v9, %v390_v8 }
  0x5f   : > { %v605_v31 = vpop.eup %604 }
  0x60   : > { %v518_v33 = vrot.slane %v605_v31, 9  ;;  %v519_v34 = vrot.slane %v605_v31, 10  ;;  %v520_v36 = vrot.slane %v605_v31, 11  ;;  %v281_v39 = vrot.slane %v605_v31, %v280_v37 }
  0x62   : > { %v265_v35 = vadd.f32 %v605_v31, %v518_v33  ;;  %v293_v42 = vcombine.high %v281_v39, %v281_v39  ;;  %v288_v43 = vrot.slane %v281_v39, %v280_v37 }
  0x64   : > { %v269_v38 = vadd.f32 %v519_v34, %v265_v35  ;;  %v300_v45 = vrot.slane %v293_v42, %v280_v37  ;;  %v290_v46 = vsel %vm274_vm1, %v288_v43, 0.0  ;;  %v305_v47 = vcombine.high %v288_v43, %v288_v43 }
  0x66   : > { %v273_v40 = vadd.f32 %v520_v36, %v269_v38  ;;  %v302_v48 = vsel %vm292_vm2, %v300_v45, %v290_v46  ;;  %v310_v49 = vcombine.high %v300_v45, %v300_v45 }
  0x67   : > { %v307_v50 = vsel %vm304_vm3, %v305_v47, %v302_v48 }
  0x68   : > { %v321_v41 = vrot.slane %v273_v40, %v280_v37  ;;  %v312_v51 = vsel %vm309_vm4, %v310_v49, %v307_v50 }
  0x6a   : > { %v328_v44 = vrot.slane %v321_v41, %v280_v37 }
  0x6c   : > { %606 = vrcp.f32 %v328_v44 }
  0x79   : > { %v607_v52 = vpop.eup %606 }
  0x7a   : > { %v331_v53 = vmul.f32 %v607_v52, %v312_v51 }
  0x7c   : > { %v332_v54 = vadd.f32 1e-10, %v331_v53 }
  0x7e   : > { %608 = vlog2.f32 %v332_v54  ;;  %v335_v55 = vsub.f32 1.0, %v332_v54 }
  0x80   : > { %v336_v56 = vmul.f32 %v335_v55, %v335_v55 }
  0x8b   : > { %v609_v57 = vpop.eup %608 }
  0x8c   : > { %v334_v58 = vmul.f32 0.6931472, %v609_v57 }
  0x8e   : > { %v337_v60 = vmul.f32 %v336_v56, %v334_v58  ;;  %352 = sbr.rel (!%p348_p12) target bundleno = 370 (0x172), region = 44 }
  0x90   : > { %v339_v61 = vadd.f32 %v338_v59, %v337_v60 }
  0x92   : > { %344 = vst.msk [vmem:[#allocation2] sm:$0x3] %vm875_vm5, %v339_v61 }
  0x99   : > { %v353_v62 = vld [vmem:[#allocation2] sm:$0x3] }
  0x9a   : > { %v358_v1 = vrot.slane %v353_v62, %v871_v15  ;;  %v362_v3 = vrot.slane %v353_v62, %v361_v63 }
  0x9c   : > { %v366_v5 = vsel %vm365_vm6, %v358_v1, 0.0  ;;  %v367_v6 = vsel %vm365_vm6, %v362_v3, 0.0 }
  0x9d   : > { %v368_v10 = vadd.f32 %v367_v6, %v366_v5 }
  0x9f   : > { %369 = vadd.xlane.f32.xlu0 %v368_v10 }
  0xa3   : > { %393 = vadd.xlane.f32.xlu0 %v392_v11 }
 0x128   : > { %v370_v12 = vpop.xlane.xlu0 %369 }
 0x129   : > { %v371_v13 = vrot.slane %v370_v12, 4 }
 0x12b   : > { %v372_v14 = vadd.f32 %v371_v13, %v370_v12 }
 0x12c   : > { %v394_v7 = vpop.xlane.xlu0 %393 }
 0x12d   : > { %v373_v16 = vrot.slane %v372_v14, 2  ;;  %v395_v17 = vrot.slane %v394_v7, 4 }
 0x12f   : > { %v396_v18 = vadd.f32 %v395_v17, %v394_v7  ;;  %v374_v19 = vadd.f32 %v373_v16, %v372_v14 }
 0x131   : > { %v397_v20 = vrot.slane %v396_v18, 2  ;;  %v375_v15 = vrot.slane %v374_v19, 1 }
 0x133   : > { %v398_v21 = vadd.f32 %v397_v20, %v396_v18  ;;  %v376_v22 = vadd.f32 %v375_v15, %v374_v19 }
 0x135   : > { %530 = vpush %v376_v22  ;;  %v399_v23 = vrot.slane %v398_v21, 1 }
 0x137   : > { %v400_v24 = vadd.f32 %v399_v23, %v398_v21 }
 0x139   : > { %532 = vpush %v400_v24 }
 0x166   : > { %s531_s12 = spop %530 }
 0x167   : > { %s404_s8 = smul.f32 0.001953125, %s531_s12 }
 0x16a   : > { %s533_s20 = spop %532 }
 0x16b   : > { %s402_s30 = smul.f32 0.001953125, %s533_s20 }
 0x16d   : > { %s403_s18 = ssub.f32 0.0, %s402_s30 }
 0x16f   : > { %s405_s19 = smul.f32 %s404_s8, %s403_s18 }
 0x171   : > { %407 = sst [smem:[#allocation9]] %s405_s19 }
 0x172 PF: > { %p550_p7 = scmp.eq.s32.totalorder %s502_s15, 1  ;;  %s741_s23 = smov [#allocation9]  }
 0x174   : > { %539 = dma.smem_to_hbm (%p550_p7), %s741_s23, 16, %s922_s2, [#allocation6]  }
 0x175   : > { %709 = dma.done.wait (%p550_p7), [#allocation6], 16  }
 0x176   : > { %711 = vsyncadd (%p550_p7), [#allocation6], 4294967280 }
 0x177   : > { %421 = sfence }
 0x178 PF: > { %s19_s14 = sadd.s32 1, %s734_s14   ;;  %s929_s9 = smov %s718_s10 }
 0x179   : > { %p16_p3 = scmp.ge.s32.totalorder %s19_s14, 4   ;;  %s930_s10 = smov %s722_s11 }
 0x17a   : > { %s931_s11 = smov %s808_s21  ;;  %s932_s12 = smov %s730_s13 }
 0x17b   : > { %s933_s13 = smov %s935_s16  ;;  %18 = sbr.rel (!%p16_p3) target bundleno = 7 (0x7), region = 87 }
 0x180   :  { %427 = vsyncpa [#allocation5], 1 }
 0x181   :  { %429 = vsyncpa [#allocation5 + $0x1], 1 }
 0x182   :  { %430 = vsyncpa [#allocation8], 1 }
 0x183   :  { %432 = vsyncpa [#allocation8 + $0x1], 1 }
 0x184   :  { %433 = vsyncpa [#allocation6], 1 }
 0x185   :  { %435 = vsyncpa [#allocation6 + $0x1], 1 }

</bundles_post_ra>
